<compile_context>
chip_gen: v6e
topology: v6e:2x2x1
jax: 0.10.0
libtpu: 0.0.40
codegen_flags: <defaults>
</compile_context>

<pallas_src>
import jax
import jax.numpy as jnp
from jax.experimental import pallas as pl
from jax.experimental.pallas import tpu as pltpu


# Double-buffered in+out data blocks are budgeted to this many bytes; the
# scoped VMEM limit is set higher to leave headroom for in-kernel temporaries.
_VMEM_DATA_BUDGET = 12 * 1024 * 1024
_VMEM_LIMIT = 32 * 1024 * 1024          # safe on v5e/v6e (128 MiB) and v7x (64 MiB)
_MAX_ROWS_PER_STEP = 1024               # 1024 rows * 128 lanes = 131K lanes / step
_MXU_MIN_CHANNELS = 8                   # min(c_in, c_out) >= 8 -> MXU path


def _round_up(x, m):
    return -(-x // m) * m


def _round_down_mult(x, m):
    return max(m, (x // m) * m)


def _largest_divisor_leq(n, k):
    k = max(1, min(n, k))
    for d in range(k, 0, -1):
        if n % d == 0:
            return d
    return 1


def _plan_rows(n, r, c_in, c_out, itemsize):
    """Pick (bn, rt): images and 128-lane rows per grid step (planes path)."""
    per_row = 2 * (c_in + c_out) * 128 * itemsize        # double-buffered in+out
    rows_budget = max(8, min(_MAX_ROWS_PER_STEP, _VMEM_DATA_BUDGET // per_row))
    if rows_budget >= r:
        # A whole image's spatial extent fits in one step: block the batch axis
        # (keeps per-step bytes large even for small D*H*W).
        rt = r
        bn_want = max(1, rows_budget // max(r, 1))
        if n >= 2:
            bn_want = min(bn_want, n // 2)               # keep >= 2 grid steps
        bn = _largest_divisor_leq(n, bn_want)
        if n == 1 and r >= 16:
            # Split spatially so both TensorCores (v7x) get work.
            rt_half = _round_down_mult((r + 1) // 2, 8)
            if rt_half < r:
                rt = rt_half
        return bn, rt
    return 1, _round_down_mult(rows_budget, 8)


def _plan_lanes(n, s, c_in, c_out, itemsize):
    """Pick (bn, ts): images and lanes per grid step (channels-on-sublane path)."""
    cin_p, cout_p = _round_up(c_in, 8), _round_up(c_out, 8)
    per_lane = 2 * (cin_p + cout_p) * itemsize
    lanes_budget = max(128, min(_MAX_ROWS_PER_STEP * 128,
                                _VMEM_DATA_BUDGET // per_lane))
    if lanes_budget >= s:
        ts = s
        bn_want = max(1, lanes_budget // max(s, 1))
        if n >= 2:
            bn_want = min(bn_want, n // 2)
        bn = _largest_divisor_leq(n, bn_want)
        return bn, ts
    return 1, _round_down_mult(lanes_budget, 128)


def _pw_vpu_planes_kernel(x_ref, w_ref, b_ref, o_ref):
    """Sublane-dense spatial planes; weights/bias as f32 scalars in SMEM.

    x_ref: (bn, c_in, rt, 128)  VMEM
    w_ref: (c_out, c_in)        SMEM (f32)
    b_ref: (c_out,)             SMEM (f32)
    o_ref: (bn, c_out, rt, 128) VMEM
    """
    bn, c_in = x_ref.shape[0], x_ref.shape[1]
    c_out = o_ref.shape[1]
    for nb in range(bn):
        # Each plane is a dense (rt, 128) slab -> full (8,128) vreg utilization.
        planes = [x_ref[nb, ci].astype(jnp.float32) for ci in range(c_in)]
        for co in range(c_out):
            acc = w_ref[co, 0] * planes[0]
            for ci in range(1, c_in):
                acc = acc + w_ref[co, ci] * planes[ci]
            o_ref[nb, co] = (acc + b_ref[co]).astype(o_ref.dtype)


def _pw_mxu_kernel(x_ref, w_ref, b_ref, o_ref):
    """Channels-on-sublane layout, MXU contraction (also ragged-spatial fallback).

    x_ref: (bn, c_in, ts)  VMEM
    w_ref: (c_out, c_in)   VMEM
    b_ref: (c_out, 1)      VMEM (f32)
    o_ref: (bn, c_out, ts) VMEM
    """
    w = w_ref[...]
    b = b_ref[...].astype(jnp.float32)
    for nb in range(x_ref.shape[0]):
        acc = jnp.dot(w, x_ref[nb], preferred_element_type=jnp.float32)
        o_ref[nb] = (acc + b).astype(o_ref.dtype)


def feature_map_block(x_ncdhw, weight, bias):
    """1x1x1 Conv3d. x: (N, C_in, D, H, W); weight: (C_out, C_in, 1, 1, 1); bias: (C_out,)."""
    n, c_in, d, h, w = x_ncdhw.shape
    c_out = weight.shape[0]
    s = d * h * w
    itemsize = jnp.dtype(x_ncdhw.dtype).itemsize
    w2d = weight.reshape(c_out, c_in)

    use_planes = (s % 128 == 0) and min(c_in, c_out) < _MXU_MIN_CHANNELS

    if use_planes:
        # ---- Fast path: sublane-dense (rows, 128) spatial planes, VPU MAC ----
        r = s // 128
        bn, rt = _plan_rows(n, r, c_in, c_out, itemsize)
        x4 = x_ncdhw.reshape(n, c_in, r, 128)          # pure reshape, no HBM copy
        # Hoist parameter casts out of the per-step kernel body.
        w_sm = w2d.astype(jnp.float32)
        b_sm = bias.astype(jnp.float32)
        grid = (pl.cdiv(n, bn), pl.cdiv(r, rt))
        out4 = pl.pallas_call(
            _pw_vpu_planes_kernel,
            out_shape=jax.ShapeDtypeStruct((n, c_out, r, 128), x_ncdhw.dtype),
            grid_spec=pltpu.PrefetchScalarGridSpec(
                num_scalar_prefetch=0,
                grid=grid,
                in_specs=[
                    pl.BlockSpec((bn, c_in, rt, 128),
                                 lambda ni, ri: (ni, 0, ri, 0)),
                    pl.BlockSpec(memory_space=pltpu.MemorySpace.SMEM),
                    pl.BlockSpec(memory_space=pltpu.MemorySpace.SMEM),
                ],
                out_specs=pl.BlockSpec((bn, c_out, rt, 128),
                                       lambda ni, ri: (ni, 0, ri, 0)),
            ),
            compiler_params=pltpu.CompilerParams(
                dimension_semantics=("parallel", "parallel"),
                vmem_limit_bytes=_VMEM_LIMIT,
            ),
        )(x4, w_sm, b_sm)
        return out4.reshape(n, c_out, d, h, w)

    # ---- MXU path: channels on sublanes (also handles s % 128 != 0) ----
    bn, ts = _plan_lanes(n, s, c_in, c_out, itemsize)
    x3 = x_ncdhw.reshape(n, c_in, s)                    # pure reshape
    w_vm = w2d.astype(x_ncdhw.dtype)
    b_vm = bias.reshape(c_out, 1).astype(jnp.float32)
    grid = (pl.cdiv(n, bn), pl.cdiv(s, ts))
    out3 = pl.pallas_call(
        _pw_mxu_kernel,
        out_shape=jax.ShapeDtypeStruct((n, c_out, s), x_ncdhw.dtype),
        grid_spec=pltpu.PrefetchScalarGridSpec(
            num_scalar_prefetch=0,
            grid=grid,
            in_specs=[
                pl.BlockSpec((bn, c_in, ts), lambda ni, si: (ni, 0, si)),
                pl.BlockSpec((c_out, c_in), lambda ni, si: (0, 0)),
                pl.BlockSpec((c_out, 1), lambda ni, si: (0, 0)),
            ],
            out_specs=pl.BlockSpec((bn, c_out, ts), lambda ni, si: (ni, 0, si)),
        ),
        compiler_params=pltpu.CompilerParams(
            dimension_semantics=("parallel", "parallel"),
            vmem_limit_bytes=_VMEM_LIMIT,
        ),
    )(x3, w_vm, b_vm)
    return out3.reshape(n, c_out, d, h, w)


if __name__ == "__main__":
    key = jax.random.PRNGKey(0)
    k_x, k_w, k_b = jax.random.split(key, 3)

    # Small shapes consistent with Conv3d input (N, C_in, D, H, W).
    N, C_IN, C_OUT, D, H, W = 2, 4, 3, 8, 16, 16

    x = jax.random.normal(k_x, (N, C_IN, D, H, W), dtype=jnp.float32)
    # Deterministic parameter init (PyTorch-like uniform fan-in scaling).
    fan_in = C_IN  # kernel_size = 1 -> fan_in = C_in
    bound = 1.0 / (fan_in ** 0.5)
    weight = jax.random.uniform(k_w, (C_OUT, C_IN, 1, 1, 1),
                                minval=-bound, maxval=bound, dtype=jnp.float32)
    bias = jax.random.uniform(k_b, (C_OUT,),
                              minval=-bound, maxval=bound, dtype=jnp.float32)

    y = feature_map_block(x, weight, bias)
    y = jax.block_until_ready(y)
    y_ref = jnp.einsum("ncdhw,oc->nodhw", x, weight.reshape(C_OUT, C_IN)) \
            + bias.reshape(1, C_OUT, 1, 1, 1)
    assert y.shape == (N, C_OUT, D, H, W)
    assert jnp.allclose(y, y_ref, atol=1e-5, rtol=1e-5)

    # Also exercise the wide-channel MXU path on a second small problem.
    N2, CI2, CO2, D2, H2, W2 = 2, 8, 16, 4, 4, 8
    x2 = jax.random.normal(k_x, (N2, CI2, D2, H2, W2), dtype=jnp.float32)
    w2 = jax.random.uniform(k_w, (CO2, CI2, 1, 1, 1),
                            minval=-0.3, maxval=0.3, dtype=jnp.float32)
    b2 = jax.random.uniform(k_b, (CO2,), minval=-0.3, maxval=0.3,
                            dtype=jnp.float32)
    y2 = jax.block_until_ready(feature_map_block(x2, w2, b2))
    y2_ref = jnp.einsum("ncdhw,oc->nodhw", x2, w2.reshape(CO2, CI2)) \
             + b2.reshape(1, CO2, 1, 1, 1)
    assert jnp.allclose(y2, y2_ref, atol=1e-5, rtol=1e-5)

    print("KERNEL_OK")
</pallas_src>

<mosaic_0001>
module attributes {stable_mosaic.version = 11 : i64} {
  func.func @_pw_vpu_planes_kernel(%arg0: i32, %arg1: i32, %arg2: memref<1x4x16x128xf32, #tpu.memory_space<vmem>>, %arg3: memref<3x4xf32, #tpu.memory_space<smem>>, %arg4: memref<3xf32, #tpu.memory_space<smem>>, %arg5: memref<1x3x16x128xf32, #tpu.memory_space<vmem>>) attributes {dimension_semantics = [#tpu.dimension_semantics<parallel>, #tpu.dimension_semantics<parallel>], iteration_bounds = array<i64: 2, 1>, scalar_prefetch = 0 : i64, scratch_operands = 0 : i64, tpu.core_type = #tpu.core_type<tc>, window_params = [{transform_indices = @transform_0, window_bounds = array<i64: 1, 4, 16, 128>}, {transform_indices = @transform_1, window_bounds = array<i64: 3, 4>}, {transform_indices = @transform_2, window_bounds = array<i64: 3>}, {transform_indices = @transform_3, window_bounds = array<i64: 1, 3, 16, 128>}]} {
    %c0 = arith.constant 0 : index
    %c0_0 = arith.constant 0 : index
    %c0_1 = arith.constant 0 : index
    %c0_2 = arith.constant 0 : index
    %0 = vector.load %arg2[%c0, %c0_0, %c0_1, %c0_2] : memref<1x4x16x128xf32, #tpu.memory_space<vmem>>, vector<1x1x16x128xf32>
    %1 = vector.shape_cast %0 : vector<1x1x16x128xf32> to vector<16x128xf32>
    %c0_3 = arith.constant 0 : index
    %c1 = arith.constant 1 : index
    %c0_4 = arith.constant 0 : index
    %c0_5 = arith.constant 0 : index
    %2 = vector.load %arg2[%c0_3, %c1, %c0_4, %c0_5] : memref<1x4x16x128xf32, #tpu.memory_space<vmem>>, vector<1x1x16x128xf32>
    %3 = vector.shape_cast %2 : vector<1x1x16x128xf32> to vector<16x128xf32>
    %c0_6 = arith.constant 0 : index
    %c2 = arith.constant 2 : index
    %c0_7 = arith.constant 0 : index
    %c0_8 = arith.constant 0 : index
    %4 = vector.load %arg2[%c0_6, %c2, %c0_7, %c0_8] : memref<1x4x16x128xf32, #tpu.memory_space<vmem>>, vector<1x1x16x128xf32>
    %5 = vector.shape_cast %4 : vector<1x1x16x128xf32> to vector<16x128xf32>
    %c0_9 = arith.constant 0 : index
    %c3 = arith.constant 3 : index
    %c0_10 = arith.constant 0 : index
    %c0_11 = arith.constant 0 : index
    %6 = vector.load %arg2[%c0_9, %c3, %c0_10, %c0_11] : memref<1x4x16x128xf32, #tpu.memory_space<vmem>>, vector<1x1x16x128xf32>
    %7 = vector.shape_cast %6 : vector<1x1x16x128xf32> to vector<16x128xf32>
    %c0_12 = arith.constant 0 : index
    %c0_13 = arith.constant 0 : index
    %8 = memref.load %arg3[%c0_12, %c0_13] : memref<3x4xf32, #tpu.memory_space<smem>>
    %9 = vector.broadcast %8 : f32 to vector<16x128xf32>
    %10 = arith.mulf %9, %1 : vector<16x128xf32>
    %c0_14 = arith.constant 0 : index
    %c1_15 = arith.constant 1 : index
    %11 = memref.load %arg3[%c0_14, %c1_15] : memref<3x4xf32, #tpu.memory_space<smem>>
    %12 = vector.broadcast %11 : f32 to vector<16x128xf32>
    %13 = arith.mulf %12, %3 : vector<16x128xf32>
    %14 = arith.addf %10, %13 : vector<16x128xf32>
    %c0_16 = arith.constant 0 : index
    %c2_17 = arith.constant 2 : index
    %15 = memref.load %arg3[%c0_16, %c2_17] : memref<3x4xf32, #tpu.memory_space<smem>>
    %16 = vector.broadcast %15 : f32 to vector<16x128xf32>
    %17 = arith.mulf %16, %5 : vector<16x128xf32>
    %18 = arith.addf %14, %17 : vector<16x128xf32>
    %c0_18 = arith.constant 0 : index
    %c3_19 = arith.constant 3 : index
    %19 = memref.load %arg3[%c0_18, %c3_19] : memref<3x4xf32, #tpu.memory_space<smem>>
    %20 = vector.broadcast %19 : f32 to vector<16x128xf32>
    %21 = arith.mulf %20, %7 : vector<16x128xf32>
    %22 = arith.addf %18, %21 : vector<16x128xf32>
    %c0_20 = arith.constant 0 : index
    %23 = memref.load %arg4[%c0_20] : memref<3xf32, #tpu.memory_space<smem>>
    %24 = vector.broadcast %23 : f32 to vector<16x128xf32>
    %25 = arith.addf %22, %24 : vector<16x128xf32>
    %c0_21 = arith.constant 0 : index
    %c0_22 = arith.constant 0 : index
    %c0_23 = arith.constant 0 : index
    %c0_24 = arith.constant 0 : index
    %26 = vector.load %arg5[%c0_21, %c0_22, %c0_23, %c0_24] : memref<1x3x16x128xf32, #tpu.memory_space<vmem>>, vector<1x1x16x128xf32>
    %27 = vector.shape_cast %26 : vector<1x1x16x128xf32> to vector<16x128xf32>
    %28 = vector.shape_cast %25 : vector<16x128xf32> to vector<1x1x16x128xf32>
    tpu.vector_store %arg5[%c0_21, %c0_22, %c0_23, %c0_24], %28 {strides = array<i32>} : memref<1x3x16x128xf32, #tpu.memory_space<vmem>>, vector<1x1x16x128xf32>,
    %c1_25 = arith.constant 1 : index
    %c0_26 = arith.constant 0 : index
    %29 = memref.load %arg3[%c1_25, %c0_26] : memref<3x4xf32, #tpu.memory_space<smem>>
    %30 = vector.broadcast %29 : f32 to vector<16x128xf32>
    %31 = arith.mulf %30, %1 : vector<16x128xf32>
    %c1_27 = arith.constant 1 : index
    %c1_28 = arith.constant 1 : index
    %32 = memref.load %arg3[%c1_27, %c1_28] : memref<3x4xf32, #tpu.memory_space<smem>>
    %33 = vector.broadcast %32 : f32 to vector<16x128xf32>
    %34 = arith.mulf %33, %3 : vector<16x128xf32>
    %35 = arith.addf %31, %34 : vector<16x128xf32>
    %c1_29 = arith.constant 1 : index
    %c2_30 = arith.constant 2 : index
    %36 = memref.load %arg3[%c1_29, %c2_30] : memref<3x4xf32, #tpu.memory_space<smem>>
    %37 = vector.broadcast %36 : f32 to vector<16x128xf32>
    %38 = arith.mulf %37, %5 : vector<16x128xf32>
    %39 = arith.addf %35, %38 : vector<16x128xf32>
    %c1_31 = arith.constant 1 : index
    %c3_32 = arith.constant 3 : index
    %40 = memref.load %arg3[%c1_31, %c3_32] : memref<3x4xf32, #tpu.memory_space<smem>>
    %41 = vector.broadcast %40 : f32 to vector<16x128xf32>
    %42 = arith.mulf %41, %7 : vector<16x128xf32>
    %43 = arith.addf %39, %42 : vector<16x128xf32>
    %c1_33 = arith.constant 1 : index
    %44 = memref.load %arg4[%c1_33] : memref<3xf32, #tpu.memory_space<smem>>
    %45 = vector.broadcast %44 : f32 to vector<16x128xf32>
    %46 = arith.addf %43, %45 : vector<16x128xf32>
    %c0_34 = arith.constant 0 : index
    %c1_35 = arith.constant 1 : index
    %c0_36 = arith.constant 0 : index
    %c0_37 = arith.constant 0 : index
    %47 = vector.load %arg5[%c0_34, %c1_35, %c0_36, %c0_37] : memref<1x3x16x128xf32, #tpu.memory_space<vmem>>, vector<1x1x16x128xf32>
    %48 = vector.shape_cast %47 : vector<1x1x16x128xf32> to vector<16x128xf32>
    %49 = vector.shape_cast %46 : vector<16x128xf32> to vector<1x1x16x128xf32>
    tpu.vector_store %arg5[%c0_34, %c1_35, %c0_36, %c0_37], %49 {strides = array<i32>} : memref<1x3x16x128xf32, #tpu.memory_space<vmem>>, vector<1x1x16x128xf32>,
    %c2_38 = arith.constant 2 : index
    %c0_39 = arith.constant 0 : index
    %50 = memref.load %arg3[%c2_38, %c0_39] : memref<3x4xf32, #tpu.memory_space<smem>>
    %51 = vector.broadcast %50 : f32 to vector<16x128xf32>
    %52 = arith.mulf %51, %1 : vector<16x128xf32>
    %c2_40 = arith.constant 2 : index
    %c1_41 = arith.constant 1 : index
    %53 = memref.load %arg3[%c2_40, %c1_41] : memref<3x4xf32, #tpu.memory_space<smem>>
    %54 = vector.broadcast %53 : f32 to vector<16x128xf32>
    %55 = arith.mulf %54, %3 : vector<16x128xf32>
    %56 = arith.addf %52, %55 : vector<16x128xf32>
    %c2_42 = arith.constant 2 : index
    %c2_43 = arith.constant 2 : index
    %57 = memref.load %arg3[%c2_42, %c2_43] : memref<3x4xf32, #tpu.memory_space<smem>>
    %58 = vector.broadcast %57 : f32 to vector<16x128xf32>
    %59 = arith.mulf %58, %5 : vector<16x128xf32>
    %60 = arith.addf %56, %59 : vector<16x128xf32>
    %c2_44 = arith.constant 2 : index
    %c3_45 = arith.constant 3 : index
    %61 = memref.load %arg3[%c2_44, %c3_45] : memref<3x4xf32, #tpu.memory_space<smem>>
    %62 = vector.broadcast %61 : f32 to vector<16x128xf32>
    %63 = arith.mulf %62, %7 : vector<16x128xf32>
    %64 = arith.addf %60, %63 : vector<16x128xf32>
    %c2_46 = arith.constant 2 : index
    %65 = memref.load %arg4[%c2_46] : memref<3xf32, #tpu.memory_space<smem>>
    %66 = vector.broadcast %65 : f32 to vector<16x128xf32>
    %67 = arith.addf %64, %66 : vector<16x128xf32>
    %c0_47 = arith.constant 0 : index
    %c2_48 = arith.constant 2 : index
    %c0_49 = arith.constant 0 : index
    %c0_50 = arith.constant 0 : index
    %68 = vector.load %arg5[%c0_47, %c2_48, %c0_49, %c0_50] : memref<1x3x16x128xf32, #tpu.memory_space<vmem>>, vector<1x1x16x128xf32>
    %69 = vector.shape_cast %68 : vector<1x1x16x128xf32> to vector<16x128xf32>
    %70 = vector.shape_cast %67 : vector<16x128xf32> to vector<1x1x16x128xf32>
    tpu.vector_store %arg5[%c0_47, %c2_48, %c0_49, %c0_50], %70 {strides = array<i32>} : memref<1x3x16x128xf32, #tpu.memory_space<vmem>>, vector<1x1x16x128xf32>,
    return
  }
  func.func @transform_0(%arg0: i32, %arg1: i32) -> (i32, i32, i32, i32) {
    %c0_i32 = arith.constant 0 : i32
    %c0_i32_0 = arith.constant 0 : i32
    %c0_i32_1 = arith.constant 0 : i32
    return %arg0, %c0_i32, %arg1, %c0_i32_0 : i32, i32, i32, i32
  }
  func.func @transform_1(%arg0: i32, %arg1: i32) -> (i32, i32) {
    %c0_i32 = arith.constant 0 : i32
    %c0_i32_0 = arith.constant 0 : i32
    %c0_i32_1 = arith.constant 0 : i32
    return %c0_i32, %c0_i32_0 : i32, i32
  }
  func.func @transform_2(%arg0: i32, %arg1: i32) -> i32 {
    %c0_i32 = arith.constant 0 : i32
    %c0_i32_0 = arith.constant 0 : i32
    return %c0_i32 : i32
  }
  func.func @transform_3(%arg0: i32, %arg1: i32) -> (i32, i32, i32, i32) {
    %c0_i32 = arith.constant 0 : i32
    %c0_i32_0 = arith.constant 0 : i32
    %c0_i32_1 = arith.constant 0 : i32
    return %arg0, %c0_i32, %arg1, %c0_i32_0 : i32, i32, i32, i32
  }
}

</mosaic_0001>

<bundles_post_ra>
// kernel: tpu_custom_call.1
= control target key start
LH: loop header
LB: loop body
LE: loop exit
PB: predicated region body
PF: predicated region fallthrough
CT: control target
= control target key end

     0   :  { %s1012_s0 = inlined_call_operand.hbm [shape: f32[2,4,16,128], index: 0, kind: input, shape index: {}]   ;;  %s1013_s1 = inlined_call_operand.hbm [shape: f32[3,4], index: 1, kind: input, shape index: {}]   ;;  %s1014_s2 = inlined_call_operand.vmem [shape: f32[3], index: 2, kind: input, shape index: {}]   ;;  %s1015_s3 = inlined_call_operand.hbm [shape: f32[2,3,16,128], index: 3, kind: output, shape index: {}]  }
   0x1   :  { %1017 = sst [smem:[#allocation14_spill]] %s1013_s1 }
   0x2   :  { %8 = vsyncpa [#allocation3], 0 }
   0x3   :  { %10 = vsyncpa [#allocation3 + $0x1], 0 }
   0x4   :  { %11 = vsyncpa [#allocation5], 0 }
   0x5   :  { %12 = vsyncpa [#allocation6], 0 }
   0x6   :  { %13 = vsyncpa [#allocation4], 0 }
   0x7   :  { %15 = vsyncpa [#allocation4 + $0x1], 0  ;;  %s759_s12 = smov 0   ;;  %s761_s13 = smov 0  }
   0x8   :  { %s763_s14 = smov 0   ;;  %s765_s15 = smov 0  }
   0x9   :  { %s767_s16 = smov 0   ;;  %s769_s17 = smov 0  }
   0xa LB: > { %s458_s18 = sadd.s32 4294967295, %s729_s17   ;;  %s459_s19 = sadd.s32 4294967294, %s729_s17   ;;  %s729_s17 = sphi %s769_s17, %s21_s17   ;;  %s725_s16 = sphi %s767_s16, %s1033_s16   ;;  %s721_s15 = sphi %s765_s15, %s1032_s15   ;;  %s717_s14 = sphi %s763_s14, %s1031_s14   ;;  %s713_s13 = sphi %s761_s13, %s1030_s13   ;;  %s709_s12 = sphi %s759_s12, %s1029_s12  }
   0xb   : > { %s42_s20 = sadd.s32 1, %s717_s14  ;;  %p49_p0 = scmp.ne.s32.totalorder %s717_s14, %s713_s13 }
   0xc   : > { %p50_p1 = scmp.eq.s32.totalorder %s729_s17, 0  ;;  %p55_p2 = scmp.ne.s32.totalorder %s713_s13, %s709_s12 }
   0xd   : > { %p797_p3 = scmp.eq.s32.totalorder %s458_s18, 0  ;;  %p123_p4 = scmp.eq.s32.totalorder %s458_s18, 1 }
   0xe   : > { %p51_p5 = por %p50_p1, %p49_p0  ;;  %p129_p6 = scmp.eq.s32.totalorder %s459_s19, 1 }
   0xf   : > { %p803_p7 = por %p797_p3, %p55_p2  ;;  %p807_p8 = por %p123_p4, %p49_p0 }
  0x10   : > { %p811_p9 = por %p129_p6, %p55_p2  ;;  %p460_p10 = scmp.ge.s32.totalorder %s729_s17, 1 }
  0x11   : > { %s1020_s23 = scalar_select %p807_p8, 1, 0 }
  0x12   : > { %s1021_s24 = scalar_select %p811_p9, 1, 0 }
  0x13   : > { %p136_p11 = scmp.lt.s32.totalorder %s729_s17, 3  ;;  %p529_p1 = scmp.lt.s32.totalorder %s729_s17, 2 }
  0x14   : > { %s158_s28 = sshll.u32 %s1014_s2, 4  ;;  %s169_s4 = sand.u32 1, %s717_s14   ;;  %s159_s28 = int_to_ptr.vmem [resolvable:$true] %s158_s28 }
  0x15   : > { %p818_p13 = pnand %p460_p10, %p136_p11  ;;  %p828_p4 = pnand %p529_p1, %p51_p5 }
  0x16   : > { %s33_s5 = sadd.s32 1, %s725_s16  ;;  %s731_s6 = smov [#allocation7]  }
  0x17   : > { %p512_p0 = pneg %p818_p13  ;;  %s1025_s1 = sld [smem:[#allocation14_spill]] }
  0x18   : > { %s598_s9 = scalar_lea.vmem %s159_s28, 16  ;;  %p606_p1 = scmp.lt.s32.totalorder %s159_s28, %s159_s28 }
  0x19   : > { %p834_p2 = pnand %p512_p0, %p797_p3  ;;  %p599_p5 = scmp.ne.s32.totalorder %s159_s28, %s598_s9 }
  0x1a   : > { %p607_p0 = scmp.lt.s32.totalorder %s598_s9, %s598_s9 }
  0x1b   : > { %p600_p6 = pneg %p834_p2 }
  0x1c   : > { %p608_p12 = por %p607_p0, %p606_p1 }
  0x1d   : > { %515 = dma.hbm_to_smem (!%p834_p2), %s1025_s1, 64, %s731_s6, [#allocation5]  }
  0x1e   : > { %p601_p10 = pnand %p600_p6, %p599_p5 }
  0x20   : > { %p602_p11 = pneg %p601_p10 }
  0x22   : > { %p609_p9 = pnand %p608_p12, %p602_p11 }
  0x24   : > { %612 = shalt.err (!%p609_p9)
}
  0x25   : > { %s732_s10 = smov [#allocation8]   ;;  %p35_p8 = scmp.ge.s32.totalorder %s33_s5, 2 }
  0x26   : > { %518 = dma.vmem_to_smem (!%p834_p2), %s159_s28, 16, %s732_s10, [#allocation6]  }
  0x27   : > { %s464_s11 = sshll.u32 %s169_s4, 6  ;;  %s497_s18 = sshll.u32 %s725_s16, 10 }
  0x28   : > { %s1035_s5 = smov (%p35_p8, %s33_s5), 0  ;;  %s181_s27 = scalar_lea.hbm %s1012_s0, %s497_s18 }
  0x29   : > { %s37_s6 = ssub.s32 %s725_s16, %s1035_s5  ;;  %s173_s7 = scalar_lea.vmem [#allocation2], %s464_s11 }
  0x2a   : > { %s182_s8 = sshll.u32 %s173_s7, 4  ;;  %p40_p9 = scmp.eq.s32.totalorder %s37_s6, 0  ;;  %s183_s8 = int_to_ptr.vmem [resolvable:$true] %s182_s8 }
  0x2b   : > { %s170_s9 = scalar_lea.sflag [#allocation3], %s169_s4  ;;  %p615_p12 = pneg %p828_p4 }
  0x2c   : > { %s860_s30 = scalar_select %p40_p9, %s717_s14, %s42_s20  }
  0x2d   : > { %s626_s28 = scalar_lea.vmem %s183_s8, 1024  ;;  %s733_s10 = smov [#allocation2]  }
  0x2e   : > { %p627_p2 = scmp.ne.s32.totalorder %s183_s8, %s626_s28  ;;  %s631_s1 = sshll.u32 %s733_s10, 4  ;;  %s632_s1 = int_to_ptr.vmem [resolvable:$false] %s631_s1 }
  0x2f   : > { %s633_s19 = scalar_lea.vmem %s632_s1, 2048  ;;  %p634_p6 = scmp.lt.s32.totalorder %s183_s8, %s632_s1 }
  0x30   : > { %p629_p8 = pnand %p627_p2, %p615_p12  ;;  %p635_p10 = scmp.lt.s32.totalorder %s633_s19, %s626_s28 }
  0x32   : > { %p630_p5 = pneg %p629_p8  ;;  %p636_p11 = por %p635_p10, %p634_p6 }
  0x34   : > { %p637_p1 = pnand %p636_p11, %p630_p5 }
  0x36   : > { %640 = shalt.err (!%p637_p1)
}
  0x37   : > { %s734_s11 = smov 128   ;;  %s735_s20 = smov 8  }
  0x38   : > { %522 = dma.hbm_to_vmem [thread:$0]  (!%p828_p4), %s181_s27, 1024, %s183_s8, %s170_s9, %s734_s11, %s734_s11, %s735_s20  }
  0x39   : > { %194 = sbr.rel (%p818_p13) target bundleno = 113 (0x71), region = 32  ;;  %s869_s4 = sand.u32 (!%p818_p13), 1, %s713_s13  }
  0x3a   : > { %s468_s18 = sshll.u32 (!%p818_p13), %s869_s4, 6  ;;  %s197_s1 = scalar_lea.sflag (!%p818_p13), [#allocation3], %s869_s4 }
  0x3b   : > { %s200_s26 = scalar_lea.vmem (!%p818_p13), [#allocation2], %s468_s18 }
  0x3e   : > { %692 = dma.done.wait (%p803_p7), %s197_s1, 1024  }
  0x3f   : > { %694 = vsyncadd (%p803_p7), %s197_s1, 4294966272 }
  0x40   : > { %696 = dma.done.wait (%p797_p3), [#allocation5], 64  }
  0x41   : > { %698 = vsyncadd (%p797_p3), [#allocation5], 4294967232 }
  0x42   : > { %700 = dma.done.wait (%p797_p3), [#allocation6], 16  }
  0x43   : > { %702 = vsyncadd (%p797_p3), [#allocation6], 4294967280 }
  0x44   : > { %213 = sfence }
  0x45   : > { %s245_s25 = sld [smem:[#allocation7]]  ;;  %v887_v0 = vld [vmem:[%s200_s26] sm:$0xff]  ;;  %v891_v1 = vld [vmem:[%s200_s26 + $0x8] sm:$0xff]  ;;  %v471_v2 = vld [vmem:[%s200_s26 + $0x10] sm:$0xff]  ;;  %s498_s19 = smul.u32 48, %s869_s4 }
  0x46   : > { %s477_s29 = sld [smem:[#allocation7 + $0x1]]  ;;  %v893_v3 = vld [vmem:[%s200_s26 + $0x18] sm:$0xff]  ;;  %v473_v4 = vld [vmem:[%s200_s26 + $0x20] sm:$0xff]  ;;  %v897_v6 = vld [vmem:[%s200_s26 + $0x28] sm:$0xff]  ;;  %p1026_p7 = scmp.ne.s32.totalorder %s1020_s23, 0 }
  0x47   : > { %s478_s27 = sld [smem:[#allocation7 + $0x2]]  ;;  %v475_v7 = vld [vmem:[%s200_s26 + $0x30] sm:$0xff]  ;;  %v905_v13 = vld [vmem:[%s200_s26 + $0x38] sm:$0xff]  ;;  %s941_s26 = scalar_lea.vmem [#allocation9], %s498_s19 }
  0x48   : > { %s885_s6 = sld [smem:[#allocation7 + $0x3]] }
  0x49   : > { %s889_s22 = sld [smem:[#allocation8]] }
  0x4a   : > { %s895_s7 = sld [smem:[#allocation7 + $0x80]] }
  0x4b   : > { %v246_v5 = vstv %s245_s25  ;;  %s899_s21 = sld [smem:[#allocation7 + $0x81]]  ;;  %s347_s25 = sshll.u32 %s941_s26, 4  ;;  %s957_s25 = int_to_ptr.vmem [resolvable:$true] %s347_s25 }
  0x4c   : > { %v247_v8 = vmul.f32 %v246_v5, %v887_v0  ;;  %v250_v9 = vstv %s477_s29  ;;  %v248_v10 = vmul.f32 %v246_v5, %v891_v1  ;;  %s903_s8 = sld [smem:[#allocation7 + $0x82]]  ;;  %s499_s29 = smul.u32 768, %s721_s15 }
  0x4d   : > { %v251_v11 = vmul.f32 %v471_v2, %v250_v9  ;;  %v256_v12 = vstv %s478_s27  ;;  %v252_v14 = vmul.f32 %v893_v3, %v250_v9  ;;  %s908_s9 = sld [smem:[#allocation7 + $0x83]]  ;;  %s736_s15 = smov [#allocation9]  }
  0x4e   : > { %v257_v15 = vmul.f32 %v473_v4, %v256_v12  ;;  %v262_v16 = vstv %s885_s6  ;;  %v258_v17 = vmul.f32 %v897_v6, %v256_v12  ;;  %s912_s28 = sld [smem:[#allocation8 + $0x1]] }
  0x4f   : > { %v253_v18 = vadd.f32 %v251_v11, %v247_v8  ;;  %v263_v19 = vmul.f32 %v475_v7, %v262_v16  ;;  %v254_v20 = vadd.f32 %v252_v14, %v248_v10  ;;  %s914_s10 = sld [smem:[#allocation7 + $0x100]]  ;;  %v268_v21 = vstv %s889_s22  ;;  %s963_s22 = scalar_lea.hbm %s1015_s3, %s499_s29 }
  0x50   : > { %v264_v22 = vmul.f32 %v905_v13, %v262_v16  ;;  %v274_v23 = vstv %s895_s7  ;;  %s920_s11 = sld [smem:[#allocation7 + $0x101]]  ;;  %s332_s7 = scalar_lea.sflag [#allocation4], %s869_s4 }
  0x51   : > { %v259_v24 = vadd.f32 %v257_v15, %v253_v18  ;;  %v260_v25 = vadd.f32 %v258_v17, %v254_v20  ;;  %v275_v26 = vmul.f32 %v274_v23, %v887_v0  ;;  %v278_v27 = vstv %s899_s21  ;;  %s924_s20 = sld [smem:[#allocation7 + $0x102]]  ;;  %s641_s21 = scalar_lea.vmem %s957_s25, 768 }
  0x52   : > { %v279_v28 = vmul.f32 %v471_v2, %v278_v27  ;;  %v284_v29 = vstv %s903_s8  ;;  %v276_v30 = vmul.f32 %v274_v23, %v891_v1  ;;  %v280_v31 = vmul.f32 %v893_v3, %v278_v27  ;;  %s929_s18 = sld [smem:[#allocation7 + $0x103]]  ;;  %p642_p3 = scmp.ne.s32.totalorder %s957_s25, %s641_s21 }
  0x53   : > { %v265_v32 = vadd.f32 %v263_v19, %v259_v24  ;;  %v266_v33 = vadd.f32 %v264_v22, %v260_v25  ;;  %v285_v34 = vmul.f32 %v473_v4, %v284_v29  ;;  %v290_v35 = vstv %s908_s9  ;;  %s932_s1 = sld [smem:[#allocation8 + $0x2]]  ;;  %s645_s8 = sshll.u32 %s736_s15, 4  ;;  %s646_s8 = int_to_ptr.vmem [resolvable:$false] %s645_s8 }
  0x54   : > { %v281_v36 = vadd.f32 %v279_v28, %v275_v26  ;;  %v291_v37 = vmul.f32 %v475_v7, %v290_v35  ;;  %v282_v38 = vadd.f32 %v280_v31, %v276_v30  ;;  %v286_v41 = vmul.f32 %v897_v6, %v284_v29  ;;  %p643_p13 = pnand %p642_p3, %p1026_p7  ;;  %s647_s9 = scalar_lea.vmem %s646_s8, 1536 }
  0x55   : > { %v269_v39 = vadd.f32 %v268_v21, %v265_v32  ;;  %v270_v40 = vadd.f32 %v268_v21, %v266_v33  ;;  %v292_v42 = vmul.f32 %v905_v13, %v290_v35  ;;  %v296_v44 = vstv %s912_s28  ;;  %p648_p0 = scmp.lt.s32.totalorder %s957_s25, %s646_s8  ;;  %p649_p9 = scmp.lt.s32.totalorder %s647_s9, %s641_s21 }
  0x56   : > { %v287_v43 = vadd.f32 %v285_v34, %v281_v36  ;;  %v303_v45 = vstv %s914_s10  ;;  %v307_v46 = vstv %s920_s11  ;;  %v288_v47 = vadd.f32 %v286_v41, %v282_v38  ;;  %p644_p4 = pneg %p643_p13 }
  0x57   : > { %271 = vst [vmem:[%s941_s26] sm:$0xff] %v269_v39  ;;  %272 = vst [vmem:[%s941_s26 + $0x8] sm:$0xff] %v270_v40  ;;  %v304_v48 = vmul.f32 %v303_v45, %v887_v0  ;;  %v308_v49 = vmul.f32 %v471_v2, %v307_v46  ;;  %v313_v50 = vstv %s924_s20  ;;  %v305_v54 = vmul.f32 %v303_v45, %v891_v1  ;;  %p650_p12 = por %p649_p9, %p648_p0 }
  0x58   : > { %v293_v51 = vadd.f32 %v291_v37, %v287_v43  ;;  %v314_v52 = vmul.f32 %v473_v4, %v313_v50  ;;  %v319_v53 = vstv %s929_s18  ;;  %v294_v55 = vadd.f32 %v292_v42, %v288_v47 }
  0x59   : > { %v310_v56 = vadd.f32 %v308_v49, %v304_v48  ;;  %v320_v57 = vmul.f32 %v475_v7, %v319_v53  ;;  %v309_v59 = vmul.f32 %v893_v3, %v307_v46  ;;  %v315_v60 = vmul.f32 %v897_v6, %v313_v50  ;;  %p651_p2 = pnand %p650_p12, %p644_p4 }
  0x5a   : > { %v297_v58 = vadd.f32 %v296_v44, %v293_v51  ;;  %v298_v61 = vadd.f32 %v296_v44, %v294_v55  ;;  %v325_v63 = vstv %s932_s1  ;;  %v321_v2 = vmul.f32 %v905_v13, %v319_v53 }
  0x5b   : > { %v316_v62 = vadd.f32 %v314_v52, %v310_v56  ;;  %v311_v0 = vadd.f32 %v309_v59, %v305_v54 }
  0x5c   : > { %485 = vst [vmem:[%s941_s26 + $0x10] sm:$0xff] %v297_v58  ;;  %486 = vst [vmem:[%s941_s26 + $0x18] sm:$0xff] %v298_v61 }
  0x5d   : > { %v322_v1 = vadd.f32 %v320_v57, %v316_v62  ;;  %v317_v4 = vadd.f32 %v315_v60, %v311_v0 }
  0x5f   : > { %v326_v5 = vadd.f32 %v325_v63, %v322_v1  ;;  %v323_v3 = vadd.f32 %v321_v2, %v317_v4 }
  0x61   : > { %492 = vst [vmem:[%s941_s26 + $0x20] sm:$0xff] %v326_v5  ;;  %v327_v6 = vadd.f32 %v325_v63, %v323_v3 }
  0x63   : > { %493 = vst [vmem:[%s941_s26 + $0x28] sm:$0xff] %v327_v6 }
  0x64   : > { %654 = shalt.err (!%p651_p2)
}
  0x65   : > { %s655_s28 = scalar_lea.hbm %s963_s22, 768  ;;  %s659_s11 = scalar_lea.hbm %s1015_s3, 1536 }
  0x66   : > { %p656_p8 = scmp.ne.s32.totalorder %s963_s22, %s655_s28  ;;  %p660_p10 = scmp.lt.s32.totalorder %s963_s22, %s1015_s3 }
  0x67   : > { %p661_p11 = scmp.lt.s32.totalorder %s659_s11, %s655_s28 }
  0x68   : > { %p657_p5 = pnand %p656_p8, %p1026_p7 }
  0x69   : > { %p662_p1 = por %p661_p11, %p660_p10 }
  0x6a   : > { %p658_p6 = pneg %p657_p5 }
  0x6c   : > { %p663_p3 = pnand %p662_p1, %p658_p6 }
  0x6e   : > { %666 = shalt.err (!%p663_p3)
}
  0x6f   : > { %s737_s1 = smov 128   ;;  %s738_s26 = smov 8  }
  0x70   : > { %510 = dma.vmem_to_hbm [thread:$0]  (%p1026_p7), %s957_s25, 768, %s963_s22, %s332_s7, %s737_s1, %s737_s1, %s738_s26  }
  0x71 PF: > { %s362_s29 = sand.u32 1, %s709_s12   ;;  %p1027_p13 = scmp.ne.s32.totalorder %s1021_s24, 0 }
  0x72   : > { %p1028_p4 = scmp.ge.s32.totalorder %s729_s17, 2  ;;  %s363_s27 = scalar_lea.sflag [#allocation4], %s362_s29 }
  0x74   : > { %p524_p0 = pnand %p1028_p4, %p1027_p13 }
  0x76   : > { %p525_p9 = pneg %p524_p0 }
  0x78   : > { %704 = dma.done.wait (%p525_p9), %s363_s27, 768  }
  0x79   : > { %706 = vsyncadd (%p525_p9), %s363_s27, 4294966528  ;;  %s21_s17 = sadd.s32 1, %s729_s17   ;;  %s1029_s12 = smov %s713_s13 }
  0x7a   : > { %p18_p12 = scmp.ge.s32.totalorder %s21_s17, 4   ;;  %s1030_s13 = smov %s717_s14 }
  0x7b   : > { %s1031_s14 = smov %s860_s30  ;;  %s1032_s15 = smov %s725_s16 }
  0x7c   : > { %s1033_s16 = smov %s1035_s5  ;;  %20 = sbr.rel (!%p18_p12) target bundleno = 10 (0xa), region = 92 }
  0x81   :  { %368 = vsyncpa [#allocation3], 1 }
  0x82   :  { %370 = vsyncpa [#allocation3 + $0x1], 1 }
  0x83   :  { %371 = vsyncpa [#allocation4], 1 }
  0x84   :  { %373 = vsyncpa [#allocation4 + $0x1], 1 }
  0x85   :  { %374 = vsyncpa [#allocation5], 1 }
  0x86   :  { %376 = vsyncpa [#allocation5 + $0x1], 1 }
  0x87   :  { %377 = vsyncpa [#allocation6], 1 }
  0x88   :  { %379 = vsyncpa [#allocation6 + $0x1], 1 }

</bundles_post_ra>
